<compile_context>
chip_gen: v7x
topology: tpu7x:2x2x1
jax: 0.10.0
libtpu: 0.0.40
codegen_flags: <defaults>
</compile_context>

<pallas_src>
import math

import jax
import jax.numpy as jnp
from jax.experimental import pallas as pl
from jax.experimental.pallas import tpu as pltpu


def _round_up(x, m):
    return (x + m - 1) // m * m


# ----------------------------- Pallas kernels --------------------------------
# One propagation step fused with the layer-sum accumulation, K-tiled:
#   new_e = A @ E            (bf16 inputs, f32 accumulation in VMEM scratch)
#   acc'  = acc + new_e      (f32)
def _make_propagate_kernel(emit_new_e):
    if emit_new_e:
        def kernel(a_ref, e_ref, acc_in_ref, new_e_ref, acc_out_ref, acc_sc):
            k = pl.program_id(1)

            @pl.when(k == 0)
            def _():
                acc_sc[...] = jnp.zeros_like(acc_sc)

            acc_sc[...] += jnp.dot(
                a_ref[...], e_ref[...], preferred_element_type=jnp.float32
            )

            @pl.when(k == pl.num_programs(1) - 1)
            def _():
                new_e = acc_sc[...]
                new_e_ref[...] = new_e.astype(new_e_ref.dtype)
                acc_out_ref[...] = acc_in_ref[...] + new_e

        return kernel
    else:
        def kernel(a_ref, e_ref, acc_in_ref, acc_out_ref, acc_sc):
            k = pl.program_id(1)

            @pl.when(k == 0)
            def _():
                acc_sc[...] = jnp.zeros_like(acc_sc)

            acc_sc[...] += jnp.dot(
                a_ref[...], e_ref[...], preferred_element_type=jnp.float32
            )

            @pl.when(k == pl.num_programs(1) - 1)
            def _():
                acc_out_ref[...] = acc_in_ref[...] + acc_sc[...]

        return kernel


def propagate_and_accumulate(adj, emb, acc, *, tm, tk, emit_new_e=True,
                             vmem_limit_bytes=32 * 1024 * 1024):
    """One LightGCN layer.

    adj: (N, N) bf16 normalized adjacency (padded).
    emb: (N, D) bf16 current layer embeddings (D a multiple of 128).
    acc: (N, D) f32 running sum over layers (updated in place via aliasing).

    Returns (new_emb_bf16, new_acc_f32) or just new_acc_f32 if emit_new_e=False.
    """
    N, D = emb.shape
    assert N % tm == 0 and N % tk == 0 and D % 128 == 0
    assert adj.shape == (N, N) and acc.shape == (N, D)

    if emit_new_e:
        out_shape = (
            jax.ShapeDtypeStruct((N, D), emb.dtype),     # new embeddings (bf16)
            jax.ShapeDtypeStruct((N, D), jnp.float32),   # updated accumulator
        )
        out_specs = (
            pl.BlockSpec((tm, D), lambda i, k: (i, 0)),
            pl.BlockSpec((tm, D), lambda i, k: (i, 0)),
        )
        aliases = {2: 1}
    else:
        out_shape = jax.ShapeDtypeStruct((N, D), jnp.float32)
        out_specs = pl.BlockSpec((tm, D), lambda i, k: (i, 0))
        aliases = {2: 0}

    return pl.pallas_call(
        _make_propagate_kernel(emit_new_e),
        out_shape=out_shape,
        grid_spec=pltpu.PrefetchScalarGridSpec(
            num_scalar_prefetch=0,
            grid=(N // tm, N // tk),                      # (row tiles, K tiles)
            in_specs=[
                pl.BlockSpec((tm, tk), lambda i, k: (i, k)),  # adjacency tile
                pl.BlockSpec((tk, D), lambda i, k: (k, 0)),   # embedding K-slab
                pl.BlockSpec((tm, D), lambda i, k: (i, 0)),   # acc row tile (resident over k)
            ],
            out_specs=out_specs,
            scratch_shapes=[pltpu.VMEM((tm, D), jnp.float32)],
        ),
        compiler_params=pltpu.CompilerParams(
            dimension_semantics=("parallel", "arbitrary"),
            vmem_limit_bytes=vmem_limit_bytes,
        ),
        input_output_aliases=aliases,
    )(adj, emb, acc)


# ----------------------------- LightGCN forward ------------------------------
def lightgcn_forward(user_weight, item_weight, norm_adj, num_layers, *,
                     tm=256, tk=1024):
    num_users = user_weight.shape[0]
    all_emb = jnp.concatenate([user_weight, item_weight], axis=0)  # (N, D) f32
    N, D = all_emb.shape

    # Lane-dense padding of D and tile-aligned padding of N (zeros are inert).
    D_pad = _round_up(D, 128)
    n128 = _round_up(N, 128)
    tm = min(tm, n128)
    tk = min(tk, n128)
    N_pad = _round_up(N, math.lcm(tm, tk))

    emb_p = jnp.zeros((N_pad, D_pad), jnp.float32).at[:N, :D].set(
        all_emb.astype(jnp.float32))
    adj_p = jnp.zeros((N_pad, N_pad), jnp.float32).at[:N, :N].set(
        norm_adj.astype(jnp.float32)).astype(jnp.bfloat16)

    acc = emb_p                              # f32 running sum, starts at E_0
    e = emb_p.astype(jnp.bfloat16)           # bf16 operand for the MXU
    for layer in range(num_layers):
        if layer == num_layers - 1:
            acc = propagate_and_accumulate(adj_p, e, acc, tm=tm, tk=tk,
                                           emit_new_e=False)
        else:
            e, acc = propagate_and_accumulate(adj_p, e, acc, tm=tm, tk=tk,
                                              emit_new_e=True)

    final = (acc / jnp.float32(num_layers + 1))[:N, :D].astype(all_emb.dtype)
    return final[:num_users], final[num_users:]


# ----------------------------- deterministic setup ---------------------------
def xavier_uniform(key, shape, dtype=jnp.float32):
    fan_in, fan_out = shape[0], shape[1]
    bound = (6.0 / (fan_in + fan_out)) ** 0.5
    return jax.random.uniform(key, shape, dtype=dtype, minval=-bound, maxval=bound)


def build_norm_adj(key, num_users, num_items, density=0.1):
    """Symmetric normalized bipartite adjacency D^{-1/2} A D^{-1/2} (dense)."""
    n = num_users + num_items
    r = (jax.random.uniform(key, (num_users, num_items)) < density).astype(jnp.float32)
    a = jnp.zeros((n, n), dtype=jnp.float32)
    a = a.at[:num_users, num_users:].set(r)
    a = a.at[num_users:, :num_users].set(r.T)
    deg = a.sum(axis=1)
    d_inv_sqrt = jnp.where(deg > 0, 1.0 / jnp.sqrt(jnp.maximum(deg, 1e-12)), 0.0)
    return a * d_inv_sqrt[:, None] * d_inv_sqrt[None, :]


if __name__ == "__main__":
    num_users = 48
    num_items = 80
    embedding_dim = 32
    num_layers = 3

    key = jax.random.PRNGKey(0)
    k_user, k_item, k_adj = jax.random.split(key, 3)

    user_weight = xavier_uniform(k_user, (num_users, embedding_dim))
    item_weight = xavier_uniform(k_item, (num_items, embedding_dim))
    norm_adj = build_norm_adj(k_adj, num_users, num_items)

    user_emb, item_emb = lightgcn_forward(user_weight, item_weight, norm_adj, num_layers)
    jax.block_until_ready((user_emb, item_emb))
    out = jnp.concatenate([user_emb, item_emb], axis=0)

    # Reference 1: matches the kernel's bf16-operand / f32-accumulate math.
    e0 = jnp.concatenate([user_weight, item_weight], axis=0)
    adj_bf = norm_adj.astype(jnp.bfloat16)
    e_bf = e0.astype(jnp.bfloat16)
    acc_ref = e0.astype(jnp.float32)
    for _ in range(num_layers):
        new_e = jnp.dot(adj_bf, e_bf, preferred_element_type=jnp.float32)
        acc_ref = acc_ref + new_e
        e_bf = new_e.astype(jnp.bfloat16)
    ref_matched = acc_ref / jnp.float32(num_layers + 1)
    assert jnp.allclose(out, ref_matched, atol=2e-3, rtol=2e-3)

    # Reference 2: original full-f32 LightGCN math (loose check on bf16 rounding).
    e = e0
    embs = [e]
    for _ in range(num_layers):
        e = norm_adj @ e
        embs.append(e)
    ref_f32 = jnp.stack(embs, axis=1).mean(axis=1)
    assert jnp.allclose(out, ref_f32, atol=5e-2)

    print("KERNEL_OK")
</pallas_src>

<mosaic_0001>
module attributes {stable_mosaic.version = 11 : i64} {
  func.func @kernel(%arg0: i32, %arg1: i32, %arg2: memref<128x128xbf16, #tpu.memory_space<vmem>>, %arg3: memref<128x128xbf16, #tpu.memory_space<vmem>>, %arg4: memref<128x128xf32, #tpu.memory_space<vmem>>, %arg5: memref<128x128xbf16, #tpu.memory_space<vmem>>, %arg6: memref<128x128xf32, #tpu.memory_space<vmem>>, %arg7: memref<128x128xf32, #tpu.memory_space<vmem>>) attributes {dimension_semantics = [#tpu.dimension_semantics<parallel>, #tpu.dimension_semantics<arbitrary>], iteration_bounds = array<i64: 1, 1>, scalar_prefetch = 0 : i64, scratch_operands = 1 : i64, tpu.core_type = #tpu.core_type<tc>, window_params = [{transform_indices = @transform_0, window_bounds = array<i64: 128, 128>}, {transform_indices = @transform_1, window_bounds = array<i64: 128, 128>}, {transform_indices = @transform_2, window_bounds = array<i64: 128, 128>}, {transform_indices = @transform_3, window_bounds = array<i64: 128, 128>}, {transform_indices = @transform_4, window_bounds = array<i64: 128, 128>}]} {
    %c0_i32 = arith.constant 0 : i32
    %0 = arith.cmpi eq, %arg1, %c0_i32 : i32
    %1 = arith.extui %0 : i1 to i32
    %c0_i32_0 = arith.constant 0 : i32
    %2 = arith.cmpi ne, %1, %c0_i32_0 : i32
    scf.if %2 {
      %cst_10 = arith.constant 0.000000e+00 : f32
      %12 = vector.broadcast %cst_10 : f32 to vector<128x128xf32>
      %c0_11 = arith.constant 0 : index
      %c0_12 = arith.constant 0 : index
      %13 = vector.load %arg7[%c0_11, %c0_12] : memref<128x128xf32, #tpu.memory_space<vmem>>, vector<128x128xf32>
      tpu.vector_store %arg7[%c0_11, %c0_12], %12 {strides = array<i32>} : memref<128x128xf32, #tpu.memory_space<vmem>>, vector<128x128xf32>,
    } else {
    }
    %c0 = arith.constant 0 : index
    %c0_1 = arith.constant 0 : index
    %3 = vector.load %arg7[%c0, %c0_1] : memref<128x128xf32, #tpu.memory_space<vmem>>, vector<128x128xf32>
    %c0_2 = arith.constant 0 : index
    %c0_3 = arith.constant 0 : index
    %4 = vector.load %arg2[%c0_2, %c0_3] : memref<128x128xbf16, #tpu.memory_space<vmem>>, vector<128x128xbf16>
    %c0_4 = arith.constant 0 : index
    %c0_5 = arith.constant 0 : index
    %5 = vector.load %arg3[%c0_4, %c0_5] : memref<128x128xbf16, #tpu.memory_space<vmem>>, vector<128x128xbf16>
    %cst = arith.constant dense<0.000000e+00> : vector<128x128xf32>
    %6 = tpu.matmul %4, %5, %cst {dimension_numbers = #tpu.dot_dimension_numbers<[1], [0], [0], [1], [0, 0, 1, 1], [], []>} : vector<128x128xbf16>, vector<128x128xbf16>, vector<128x128xf32> -> vector<128x128xf32>
    %7 = arith.addf %3, %6 : vector<128x128xf32>
    %c0_6 = arith.constant 0 : index
    %c0_7 = arith.constant 0 : index
    %8 = vector.load %arg7[%c0_6, %c0_7] : memref<128x128xf32, #tpu.memory_space<vmem>>, vector<128x128xf32>
    tpu.vector_store %arg7[%c0_6, %c0_7], %7 {strides = array<i32>} : memref<128x128xf32, #tpu.memory_space<vmem>>, vector<128x128xf32>,
    %c0_i32_8 = arith.constant 0 : i32
    %9 = arith.cmpi eq, %arg1, %c0_i32_8 : i32
    %10 = arith.extui %9 : i1 to i32
    %c0_i32_9 = arith.constant 0 : i32
    %11 = arith.cmpi ne, %10, %c0_i32_9 : i32
    scf.if %11 {
      %c0_10 = arith.constant 0 : index
      %c0_11 = arith.constant 0 : index
      %12 = vector.load %arg7[%c0_10, %c0_11] : memref<128x128xf32, #tpu.memory_space<vmem>>, vector<128x128xf32>
      %13 = arith.truncf %12 : vector<128x128xf32> to vector<128x128xbf16>
      %c0_12 = arith.constant 0 : index
      %c0_13 = arith.constant 0 : index
      %14 = vector.load %arg5[%c0_12, %c0_13] : memref<128x128xbf16, #tpu.memory_space<vmem>>, vector<128x128xbf16>
      tpu.vector_store %arg5[%c0_12, %c0_13], %13 {strides = array<i32>} : memref<128x128xbf16, #tpu.memory_space<vmem>>, vector<128x128xbf16>,
      %c0_14 = arith.constant 0 : index
      %c0_15 = arith.constant 0 : index
      %15 = vector.load %arg4[%c0_14, %c0_15] : memref<128x128xf32, #tpu.memory_space<vmem>>, vector<128x128xf32>
      %16 = arith.addf %15, %12 : vector<128x128xf32>
      %c0_16 = arith.constant 0 : index
      %c0_17 = arith.constant 0 : index
      %17 = vector.load %arg6[%c0_16, %c0_17] : memref<128x128xf32, #tpu.memory_space<vmem>>, vector<128x128xf32>
      tpu.vector_store %arg6[%c0_16, %c0_17], %16 {strides = array<i32>} : memref<128x128xf32, #tpu.memory_space<vmem>>, vector<128x128xf32>,
    } else {
    }
    return
  }
  func.func @transform_0(%arg0: i32, %arg1: i32) -> (i32, i32) {
    %c0_i32 = arith.constant 0 : i32
    return %arg0, %arg1 : i32, i32
  }
  func.func @transform_1(%arg0: i32, %arg1: i32) -> (i32, i32) {
    %c0_i32 = arith.constant 0 : i32
    %c0_i32_0 = arith.constant 0 : i32
    return %arg1, %c0_i32 : i32, i32
  }
  func.func @transform_2(%arg0: i32, %arg1: i32) -> (i32, i32) {
    %c0_i32 = arith.constant 0 : i32
    %c0_i32_0 = arith.constant 0 : i32
    return %arg0, %c0_i32 : i32, i32
  }
  func.func @transform_3(%arg0: i32, %arg1: i32) -> (i32, i32) {
    %c0_i32 = arith.constant 0 : i32
    %c0_i32_0 = arith.constant 0 : i32
    return %arg0, %c0_i32 : i32, i32
  }
  func.func @transform_4(%arg0: i32, %arg1: i32) -> (i32, i32) {
    %c0_i32 = arith.constant 0 : i32
    %c0_i32_0 = arith.constant 0 : i32
    return %arg0, %c0_i32 : i32, i32
  }
}

</mosaic_0001>

<bundles_post_ra>
// kernel: tpu_custom_call.1
= control target key start
LH: loop header
LB: loop body
LE: loop exit
PB: predicated region body
PF: predicated region fallthrough
CT: control target
= control target key end

     0   :  { %10 = vsyncpa [#allocation4], 0  ;;  %s896_s0 = inlined_call_operand.vmem [shape: bf16[128,128], index: 0, kind: input, shape index: {}]   ;;  %s897_s1 = inlined_call_operand.vmem [shape: bf16[128,128], index: 1, kind: input, shape index: {}]   ;;  %s898_s2 = inlined_call_operand.hbm [shape: f32[128,128], index: 2, kind: input, shape index: {}, may-alias: {2,4}]   ;;  %s899_s3 = inlined_call_operand.hbm [shape: bf16[128,128], index: 3, kind: output, shape index: {0}]   ;;  %s900_s4 = inlined_call_operand.hbm [shape: f32[128,128], index: 4, kind: output, shape index: {1}, may-alias: {2,4}]  }
   0x1   :  { %11 = vsyncpa [#allocation5], 0 }
   0x2   :  { %12 = vsyncpa [#allocation8], 0  ;;  %s760_s15 = smov [#allocation3]   ;;  %s688_s19 = scalar_lea.hbm %s898_s2, 2048 }
   0x3   :  { %s22_s16 = sshll.u32 %s760_s15, 4  ;;  %p689_p0 = scmp.ne.s32.totalorder %s898_s2, %s688_s19  ;;  %s23_s16 = int_to_ptr.vmem [resolvable:$true] %s22_s16 }
   0x4   :  { %p692_p1 = scmp.lt.u32.totalorder %s688_s19, %s898_s2 }
   0x6   :  { %p694_p2 = pnand %p692_p1, %p689_p0 }
   0x8   :  { %697 = shalt.err (!%p694_p2)
}
   0x9   :  { %s698_s24 = scalar_lea.vmem %s23_s16, 2048  ;;  %p703_p4 = scmp.lt.s32.totalorder %s23_s16, %s23_s16 }
   0xa   :  { %p699_p3 = scmp.ne.s32.totalorder %s23_s16, %s698_s24  ;;  %p704_p5 = scmp.lt.s32.totalorder %s698_s24, %s698_s24 }
   0xc   :  { %p705_p6 = por %p704_p5, %p703_p4 }
   0xe   :  { %p706_p7 = pnand %p705_p6, %p699_p3 }
  0x10   :  { %709 = shalt.err (!%p706_p7)
}
  0x11   :  { %s761_s25 = smov 128   ;;  %s762_s26 = smov 8  }
  0x12   :  { %28 = dma.hbm_to_vmem [thread:$0]  %s898_s2, 2048, %s23_s16, [#allocation4], %s761_s25, %s761_s25, %s762_s26  }
  0x13   :  { %754 = dma.done.wait [#allocation4], 2048  }
  0x14   :  { %755 = vsyncadd [#allocation4], 4294965248  ;;  %v672_v0 = vld [vmem:[%s897_s1] sm:$0xff]   ;;  %v673_v1 = vld [vmem:[%s897_s1 + $0x8] sm:$0xff]   ;;  %s764_s9 = smov [#allocation7]  }
  0x15   :  { %617 = vmatprep.subr.bf16.mxu0 %v672_v0  ;;  %649 = vmatprep.subr.bf16.mxu1 %v672_v0  ;;  %v674_v2 = vld [vmem:[%s897_s1 + $0x10] sm:$0xff]   ;;  %v675_v3 = vld [vmem:[%s897_s1 + $0x18] sm:$0xff]   ;;  %v680_v4 = vld [vmem:[%s896_s0] sm:$0xff]   ;;  %s490_s10 = sshll.u32 %s764_s9, 4  ;;  %s857_s10 = int_to_ptr.vmem [resolvable:$true] %s490_s10 }
  0x16   :  { %618 = vmatpush3.bf16.msra.mxu0 %v672_v0  ;;  %657 = vmatpush3.bf16.msra.mxu1 %v672_v0  ;;  %v681_v5 = vld [vmem:[%s896_s0 + $0x20] sm:$0xff]   ;;  %v677_v7 = vld [vmem:[%s897_s1 + $0x28] sm:$0xff]   ;;  %v678_v8 = vld [vmem:[%s897_s1 + $0x30] sm:$0xff]  }
  0x17   :  { %619 = vmatprep.subr.bf16.mxu0 %v673_v1  ;;  %650 = vmatprep.subr.bf16.mxu1 %v673_v1  ;;  %v676_v6 = vld [vmem:[%s897_s1 + $0x20] sm:$0xff]   ;;  %v679_v9 = vld [vmem:[%s897_s1 + $0x38] sm:$0xff]   ;;  %v682_v10 = vld [vmem:[%s896_s0 + $0x8] sm:$0xff]  }
  0x18   :  { %633 = vmatprep.mubr.bf16.mxu0 %v680_v4  ;;  %641 = vmatprep.mubr.bf16.mxu1 %v681_v5  ;;  %v683_v11 = vld [vmem:[%s896_s0 + $0x28] sm:$0xff]   ;;  %v684_v12 = vld [vmem:[%s896_s0 + $0x10] sm:$0xff]   ;;  %v686_v14 = vld [vmem:[%s896_s0 + $0x18] sm:$0xff]  }
  0x19   :  { %v685_v13 = vld [vmem:[%s896_s0 + $0x30] sm:$0xff]   ;;  %v687_v15 = vld [vmem:[%s896_s0 + $0x38] sm:$0xff]   ;;  %v425_v18 = vld [vmem:[#allocation3] sm:$0xff]  ;;  %s763_s0 = smov [#allocation6]  }
  0x1a   :  { %620 = vmatpush3.bf16.msra.mxu0 %v673_v1  ;;  %658 = vmatpush3.bf16.msra.mxu1 %v673_v1  ;;  %v427_v16 = vld [vmem:[#allocation3 + $0x10] sm:$0xff]  ;;  %v433_v19 = vld [vmem:[#allocation3 + $0x40] sm:$0xff]  ;;  %v428_v22 = vld [vmem:[#allocation3 + $0x18] sm:$0xff]  ;;  %s478_s2 = sshll.u32 %s763_s0, 4  ;;  %s855_s2 = int_to_ptr.vmem [resolvable:$true] %s478_s2 }
  0x1b   :  { %621 = vmatprep.subr.bf16.mxu0 %v674_v2  ;;  %651 = vmatprep.subr.bf16.mxu1 %v674_v2  ;;  %v435_v17 = vld [vmem:[#allocation3 + $0x50] sm:$0xff]  ;;  %v436_v23 = vld [vmem:[#allocation3 + $0x58] sm:$0xff]  ;;  %v426_v28 = vld [vmem:[#allocation3 + $0x8] sm:$0xff]  ;;  %s710_s11 = scalar_lea.vmem %s855_s2, 1024  ;;  %p715_p9 = scmp.lt.s32.totalorder %s855_s2, %s855_s2 }
  0x1c   :  { %v434_v29 = vld [vmem:[#allocation3 + $0x48] sm:$0xff]  ;;  %v431_v44 = vld [vmem:[#allocation3 + $0x30] sm:$0xff]  ;;  %v429_v46 = vld [vmem:[#allocation3 + $0x20] sm:$0xff]  ;;  %p711_p8 = scmp.ne.s32.totalorder %s855_s2, %s710_s11  ;;  %p716_p10 = scmp.lt.s32.totalorder %s710_s11, %s710_s11 }
  0x1d   :  { %v439_v45 = vld [vmem:[#allocation3 + $0x70] sm:$0xff]  ;;  %v437_v47 = vld [vmem:[#allocation3 + $0x60] sm:$0xff]  ;;  %v432_v50 = vld [vmem:[#allocation3 + $0x38] sm:$0xff] }
  0x1e   :  { %622 = vmatpush3.bf16.msra.mxu0 %v674_v2  ;;  %659 = vmatpush3.bf16.msra.mxu1 %v674_v2  ;;  %v440_v51 = vld [vmem:[#allocation3 + $0x78] sm:$0xff]  ;;  %v430_v56 = vld [vmem:[#allocation3 + $0x28] sm:$0xff]  ;;  %p717_p11 = por %p716_p10, %p715_p9 }
  0x1f   :  { %623 = vmatprep.subr.bf16.mxu0 %v675_v3  ;;  %652 = vmatprep.subr.bf16.mxu1 %v675_v3  ;;  %v438_v57 = vld [vmem:[#allocation3 + $0x68] sm:$0xff] }
  0x20   :  { %p718_p12 = pnand %p717_p11, %p711_p8 }
  0x22   :  { %624 = vmatpush3.bf16.msra.mxu0 %v675_v3  ;;  %660 = vmatpush3.bf16.msra.mxu1 %v675_v3 }
  0x23   :  { %625 = vmatprep.subr.bf16.mxu0 %v676_v6  ;;  %653 = vmatprep.subr.bf16.mxu1 %v676_v6 }
  0x26   :  { %626 = vmatpush3.bf16.msra.mxu0 %v676_v6  ;;  %661 = vmatpush3.bf16.msra.mxu1 %v676_v6 }
  0x27   :  { %627 = vmatprep.subr.bf16.mxu0 %v677_v7  ;;  %654 = vmatprep.subr.bf16.mxu1 %v677_v7 }
  0x2a   :  { %628 = vmatpush3.bf16.msra.mxu0 %v677_v7  ;;  %662 = vmatpush3.bf16.msra.mxu1 %v677_v7 }
  0x2b   :  { %629 = vmatprep.subr.bf16.mxu0 %v678_v8  ;;  %655 = vmatprep.subr.bf16.mxu1 %v678_v8 }
  0x2e   :  { %630 = vmatpush3.bf16.msra.mxu0 %v678_v8  ;;  %663 = vmatpush3.bf16.msra.mxu1 %v678_v8 }
  0x2f   :  { %631 = vmatprep.subr.bf16.mxu0 %v679_v9  ;;  %656 = vmatprep.subr.bf16.mxu1 %v679_v9 }
  0x32   :  { %632 = vmatpush3.bf16.msra.mxu0 %v679_v9  ;;  %664 = vmatpush3.bf16.msra.mxu1 %v679_v9 }
  0x35   :  { %634 = vmatmul.mubr.bf16.vlgmr.msra.gmra.mrb[0].mxu0 %v682_v10  ;;  %642 = vmatmul.mubr.bf16.vlgmr.msra.gmra.mrb[0].mxu1 %v683_v11 }
  0x36   :  { %637 = vmatprep.mubr.bf16.mxu0 %v684_v12  ;;  %645 = vmatprep.mubr.bf16.mxu1 %v685_v13 }
  0x3d   :  { %638 = vmatmul.mubr.bf16.gmra.mrb[4].mxu0 %v686_v14  ;;  %646 = vmatmul.mubr.bf16.gmra.mrb[4].mxu1 %v687_v15 }
 0x108   :  { %v635_v20 = vpop.f32.mrb[0].mxu0  ;;  %v643_v21 = vpop.f32.mrb[0].mxu1 }
 0x109   :  { %v443_v24 = vadd.f32 %v635_v20, %v427_v16  ;;  %v451_v25 = vadd.f32 %v643_v21, %v435_v17  ;;  %v231_v26 = vpop.f32.mrb[1].mxu0  ;;  %v263_v27 = vpop.f32.mrb[1].mxu1 }
 0x10a   :  { %v441_v30 = vadd.f32 %v425_v18, %v231_v26  ;;  %v449_v31 = vadd.f32 %v433_v19, %v263_v27  ;;  %v636_v32 = vpop.f32.mrb[2].mxu0  ;;  %v644_v33 = vpop.f32.mrb[2].mxu1 }
 0x10b   :  { %459 = vst [vmem:[#allocation7 + $0x10] sm:$0xff] %v443_v24  ;;  %467 = vst [vmem:[#allocation7 + $0x50] sm:$0xff] %v451_v25  ;;  %v562_v34 = vpack.c.bf16 %v636_v32, %v635_v20  ;;  %v444_v35 = vadd.f32 %v636_v32, %v428_v22  ;;  %v582_v36 = vpack.c.bf16 %v644_v33, %v643_v21  ;;  %v234_v38 = vpop.f32.mrb[3].mxu0  ;;  %v266_v39 = vpop.f32.mrb[3].mxu1 }
 0x10c   :  { %v452_v37 = vadd.f32 %v644_v33, %v436_v23  ;;  %457 = vst [vmem:[#allocation7] sm:$0xff] %v441_v30  ;;  %465 = vst [vmem:[#allocation7 + $0x40] sm:$0xff] %v449_v31  ;;  %v557_v40 = vpack.c.bf16 %v234_v38, %v231_v26  ;;  %v442_v41 = vadd.f32 %v426_v28, %v234_v38 }
 0x10d   :  { %v577_v42 = vpack.c.bf16 %v266_v39, %v263_v27  ;;  %v450_v43 = vadd.f32 %v434_v29, %v266_v39  ;;  %594 = vst [vmem:[#allocation6 + $0x8] sm:$0xff] %v562_v34   ;;  %460 = vst [vmem:[#allocation7 + $0x18] sm:$0xff] %v444_v35 }
 0x10e   :  { %598 = vst [vmem:[#allocation6 + $0x28] sm:$0xff] %v582_v36   ;;  %468 = vst [vmem:[#allocation7 + $0x58] sm:$0xff] %v452_v37 }
 0x10f   :  { %558 = vst [vmem:[#allocation6] sm:$0xff] %v557_v40   ;;  %458 = vst [vmem:[#allocation7 + $0x8] sm:$0xff] %v442_v41 }
 0x110   :  { %597 = vst [vmem:[#allocation6 + $0x20] sm:$0xff] %v577_v42   ;;  %466 = vst [vmem:[#allocation7 + $0x48] sm:$0xff] %v450_v43  ;;  %v639_v48 = vpop.f32.mrb[4].mxu0  ;;  %v647_v49 = vpop.f32.mrb[4].mxu1 }
 0x111   :  { %v447_v52 = vadd.f32 %v639_v48, %v431_v44  ;;  %v455_v53 = vadd.f32 %v647_v49, %v439_v45  ;;  %v247_v54 = vpop.f32.mrb[5].mxu0  ;;  %v279_v55 = vpop.f32.mrb[5].mxu1 }
 0x112   :  { %v445_v58 = vadd.f32 %v429_v46, %v247_v54  ;;  %v453_v59 = vadd.f32 %v437_v47, %v279_v55  ;;  %v640_v60 = vpop.f32.mrb[6].mxu0  ;;  %v648_v61 = vpop.f32.mrb[6].mxu1 }
 0x113   :  { %463 = vst [vmem:[#allocation7 + $0x30] sm:$0xff] %v447_v52  ;;  %471 = vst [vmem:[#allocation7 + $0x70] sm:$0xff] %v455_v53  ;;  %v572_v62 = vpack.c.bf16 %v640_v60, %v639_v48  ;;  %v448_v63 = vadd.f32 %v640_v60, %v432_v50  ;;  %v592_v0 = vpack.c.bf16 %v648_v61, %v647_v49  ;;  %v250_v2 = vpop.f32.mrb[7].mxu0  ;;  %v282_v3 = vpop.f32.mrb[7].mxu1 }
 0x114   :  { %v456_v1 = vadd.f32 %v648_v61, %v440_v51  ;;  %461 = vst [vmem:[#allocation7 + $0x20] sm:$0xff] %v445_v58  ;;  %469 = vst [vmem:[#allocation7 + $0x60] sm:$0xff] %v453_v59  ;;  %v567_v4 = vpack.c.bf16 %v250_v2, %v247_v54  ;;  %v446_v5 = vadd.f32 %v430_v56, %v250_v2 }
 0x115   :  { %v587_v6 = vpack.c.bf16 %v282_v3, %v279_v55  ;;  %v454_v7 = vadd.f32 %v438_v57, %v282_v3  ;;  %596 = vst [vmem:[#allocation6 + $0x18] sm:$0xff] %v572_v62   ;;  %464 = vst [vmem:[#allocation7 + $0x38] sm:$0xff] %v448_v63 }
 0x116   :  { %600 = vst [vmem:[#allocation6 + $0x38] sm:$0xff] %v592_v0   ;;  %472 = vst [vmem:[#allocation7 + $0x78] sm:$0xff] %v456_v1 }
 0x117   :  { %595 = vst [vmem:[#allocation6 + $0x10] sm:$0xff] %v567_v4   ;;  %462 = vst [vmem:[#allocation7 + $0x28] sm:$0xff] %v446_v5 }
 0x118   :  { %599 = vst [vmem:[#allocation6 + $0x30] sm:$0xff] %v587_v6   ;;  %470 = vst [vmem:[#allocation7 + $0x68] sm:$0xff] %v454_v7 }
 0x119   :  { %721 = shalt.err (!%p718_p12)
}
 0x11a   :  { %s722_s14 = scalar_lea.hbm %s899_s3, 1024 }
 0x11b   :  { %p723_p13 = scmp.ne.s32.totalorder %s899_s3, %s722_s14  ;;  %p726_p0 = scmp.lt.u32.totalorder %s722_s14, %s899_s3 }
 0x11d   :  { %p728_p1 = pnand %p726_p0, %p723_p13 }
 0x11f   :  { %731 = shalt.err (!%p728_p1)
}
 0x120   :  { %s765_s19 = smov 64   ;;  %s766_s20 = smov 4  }
 0x121   :  { %484 = dma.vmem_to_hbm [thread:$0]  %s855_s2, 1024, %s899_s3, [#allocation5], %s765_s19, %s765_s19, %s766_s20  }
 0x122   :  { %s732_s23 = scalar_lea.vmem %s857_s10, 2048  ;;  %p737_p3 = scmp.lt.s32.totalorder %s857_s10, %s857_s10 }
 0x123   :  { %p733_p2 = scmp.ne.s32.totalorder %s857_s10, %s732_s23  ;;  %p738_p4 = scmp.lt.s32.totalorder %s732_s23, %s732_s23 }
 0x125   :  { %p739_p5 = por %p738_p4, %p737_p3 }
 0x127   :  { %p740_p6 = pnand %p739_p5, %p733_p2 }
 0x129   :  { %743 = shalt.err (!%p740_p6)
}
 0x12a   :  { %s744_s28 = scalar_lea.hbm %s900_s4, 2048 }
 0x12b   :  { %p745_p7 = scmp.ne.s32.totalorder %s900_s4, %s744_s28  ;;  %p748_p8 = scmp.lt.u32.totalorder %s744_s28, %s900_s4 }
 0x12d   :  { %p750_p9 = pnand %p748_p8, %p745_p7 }
 0x12f   :  { %753 = shalt.err (!%p750_p9)
}
 0x130   :  { %496 = dma.vmem_to_hbm [thread:$0]  %s857_s10, 2048, %s900_s4, [#allocation8], %s761_s25, %s761_s25, %s762_s26  }
 0x131   :  { %756 = dma.done.wait [#allocation5], 1024  }
 0x132   :  { %757 = vsyncadd [#allocation5], 4294966272 }
 0x133   :  { %758 = dma.done.wait [#allocation8], 2048  }
 0x134   :  { %759 = vsyncadd [#allocation8], 4294965248 }
 0x135   :  { %503 = vsyncpa [#allocation4], 1 }
 0x136   :  { %504 = vsyncpa [#allocation5], 1 }
 0x137   :  { %505 = vsyncpa [#allocation8], 1 }

</bundles_post_ra>
